<compile_context>
chip_gen: v5e
topology: v5e:2x2
jax: 0.10.0
libtpu: 0.0.40
codegen_flags: <defaults>
</compile_context>

<pallas_src>
import numpy as np
import jax
import jax.numpy as jnp
from jax import lax
from jax.experimental import pallas as pl
from jax.experimental.pallas import tpu as pltpu

# ---------------- config (small, consistent with the module) ----------------
B = 2
NUM_EMB_IN = 8
DIM_EMB = 16
NUM_EMB_LCB = 2
NUM_EMB_FMB = 2
RANK_FMB = 4
NUM_HIDDEN = 2          # MLP: NUM_HIDDEN x (Linear+ReLU[+Dropout]) then Linear
DIM_HIDDEN = 32
DROPOUT = 0.0

NUM_EMB_OUT = NUM_EMB_LCB + NUM_EMB_FMB        # 4 != NUM_EMB_IN -> residual projection used
FM_DIM = NUM_EMB_IN * RANK_FMB                 # 32  (FM LayerNorm / MLP input dim)
MLP_OUT = NUM_EMB_FMB * DIM_EMB                # 32  (MLP output dim)
EPS = 1e-5

IN_FLAT = NUM_EMB_IN * DIM_EMB                 # 128 (lane-dense input width)
OUT_FLAT = NUM_EMB_OUT * DIM_EMB               # 64  (real flat output width)
OUT_PAD = 128                                  # lane-padded output width (one full vreg)
B_PAD = 8                                      # sublane-padded batch
TILE_B = B_PAD                                 # whole (padded) batch in one grid step

# ---- packed "small params" slab layout (rows), width = OUT_PAD ----
SMALL_W = OUT_PAD
ROW_LNFM_G, ROW_LNFM_B, ROW_B0, ROW_B1, ROW_BO = 0, 1, 2, 3, 4
ROW_WFM = 5                                    # rows [5, 5+NUM_EMB_IN): w_fm
ROW_LN_G = ROW_WFM + NUM_EMB_IN
ROW_LN_B = ROW_LN_G + 1
SMALL_ROWS = ROW_LN_B + 1                      # 15

MLP_ROWS = FM_DIM + 2 * DIM_HIDDEN             # 96 (w0 | w1 | wo stacked)


# ---------------- Pallas kernel (one padded batch tile per grid step) ----------------
def wukong_kernel(xf_ref, x3_ref, wlin_ref, wmlp_ref, small_ref, pool_ref, out_ref):
    xflat = xf_ref[...]                                   # (TILE_B, IN_FLAT)
    x3 = x3_ref[...]                                      # (TILE_B, E_in, D)
    small = small_ref[...]                                # (SMALL_ROWS, SMALL_W)
    wmlp = wmlp_ref[...]                                  # (MLP_ROWS, OUT_PAD)

    # --- unpack the small-parameter slab (static slices, no extra DMA streams) ---
    ln_fm_g = small[ROW_LNFM_G:ROW_LNFM_G + 1, :FM_DIM]
    ln_fm_b = small[ROW_LNFM_B:ROW_LNFM_B + 1, :FM_DIM]
    b0 = small[ROW_B0:ROW_B0 + 1, :DIM_HIDDEN]
    b1 = small[ROW_B1:ROW_B1 + 1, :DIM_HIDDEN]
    bo = small[ROW_BO:ROW_BO + 1, :OUT_PAD]               # zero beyond MLP_OUT columns
    w_fm = small[ROW_WFM:ROW_WFM + NUM_EMB_IN, :RANK_FMB]  # (E_in, rank)
    ln_g_t = small[ROW_LN_G:ROW_LN_G + 1, :OUT_PAD]        # gamma tiled per D group, 0 in pad
    ln_b_t = small[ROW_LN_B:ROW_LN_B + 1, :OUT_PAD]        # beta  tiled per D group, 0 in pad

    w0 = wmlp[0:FM_DIM, :DIM_HIDDEN]
    w1 = wmlp[FM_DIM:FM_DIM + DIM_HIDDEN, :DIM_HIDDEN]
    wo = wmlp[FM_DIM + DIM_HIDDEN:MLP_ROWS, :OUT_PAD]      # zero beyond MLP_OUT columns

    # --- fused LinearCompressBlock + residual projection: one 2-D MXU matmul ---
    # y[b, o*D + d] = sum_e x[b,e,d] * (w_res[e,o] + w_lcb[e, o - E_fmb] for lcb columns)
    # columns already ordered (fmb | lcb | zero-pad) -> matches concat((fmb, lcb)) layout.
    y = jnp.dot(xflat, wlin_ref[...], preferred_element_type=jnp.float32)  # (TILE_B, OUT_PAD)

    # --- FactorizationMachineBlock front-end: batched Gram, no per-sample loop ---
    gram = jnp.einsum('bed,bfd->bef', x3, x3,
                      preferred_element_type=jnp.float32)                  # (TILE_B, E, E)
    w_fm_b = jnp.broadcast_to(w_fm[None], (TILE_B, NUM_EMB_IN, RANK_FMB))
    fm3 = jnp.einsum('bef,bfr->ber', gram, w_fm_b,
                     preferred_element_type=jnp.float32)                   # (TILE_B, E, R)
    fm = fm3.reshape(TILE_B, FM_DIM)                                       # e-major, r-minor

    # LayerNorm over num_emb_in * rank
    mu = jnp.mean(fm, axis=-1, keepdims=True)
    var = jnp.mean((fm - mu) ** 2, axis=-1, keepdims=True)
    h = (fm - mu) * lax.rsqrt(var + EPS) * ln_fm_g + ln_fm_b

    # MLP: [Linear + ReLU] x NUM_HIDDEN, then Linear (dropout = identity in eval)
    h = jnp.maximum(jnp.dot(h, w0, preferred_element_type=jnp.float32) + b0, 0.0)
    h = jnp.maximum(jnp.dot(h, w1, preferred_element_type=jnp.float32) + b1, 0.0)
    h = jnp.dot(h, wo, preferred_element_type=jnp.float32) + bo            # (TILE_B, OUT_PAD)

    # concat((fmb, lcb)) + residual in flat layout: h has zeros in lcb/pad columns.
    total = y + h

    # final LayerNorm over dim_emb via block-diagonal 1/D pooling matmul (MXU, not XLU)
    pool = pool_ref[...]                                                   # (OUT_PAD, OUT_PAD)
    mean_b = jnp.dot(total, pool, preferred_element_type=jnp.float32)
    cent = total - mean_b
    var_b = jnp.dot(cent * cent, pool, preferred_element_type=jnp.float32)
    # single unmasked full-vreg store (pad columns evaluate to exactly 0)
    out_ref[...] = cent * lax.rsqrt(var_b + EPS) * ln_g_t + ln_b_t


# ---------------- wrapper: one-time parameter packing + jitted forward ----------------
def _pack_params(params):
    """Compute once per parameter set (hoisted out of the forward)."""
    (w_lcb, w_fm, ln_fm_g, ln_fm_b,
     w0, b0, w1, b1, wo, bo,
     w_res, ln_g, ln_b) = params

    # Fused (residual projection + LCB) weight in flat (E_in*D, OUT_PAD) layout.
    eye = jnp.eye(DIM_EMB, dtype=jnp.float32)
    w_res_exp = jnp.kron(w_res, eye)                     # (IN_FLAT, OUT_FLAT)
    w_lcb_exp = jnp.kron(w_lcb, eye)                     # (IN_FLAT, NUM_EMB_LCB*DIM_EMB)
    w_lin64 = w_res_exp.at[:, NUM_EMB_FMB * DIM_EMB:].add(w_lcb_exp)
    w_lin = jnp.pad(w_lin64, ((0, 0), (0, OUT_PAD - OUT_FLAT)))   # zero pad columns

    # MLP weight slab; output weight padded to OUT_PAD columns (zeros in lcb/pad columns)
    def cols(m):
        return jnp.pad(m, ((0, 0), (0, OUT_PAD - m.shape[1])))
    w_mlp = jnp.concatenate([cols(w0), cols(w1), cols(wo)], axis=0)  # (MLP_ROWS, OUT_PAD)

    # small-parameter slab
    def row(v):
        v = v.reshape(1, -1)
        return jnp.pad(v, ((0, 0), (0, SMALL_W - v.shape[1])))
    ln_g_t = jnp.tile(ln_g.reshape(1, DIM_EMB), (1, NUM_EMB_OUT))    # (1, OUT_FLAT)
    ln_b_t = jnp.tile(ln_b.reshape(1, DIM_EMB), (1, NUM_EMB_OUT))
    small = jnp.concatenate(
        [row(ln_fm_g), row(ln_fm_b), row(b0), row(b1), row(bo),
         jnp.pad(w_fm, ((0, 0), (0, SMALL_W - RANK_FMB))),
         row(ln_g_t), row(ln_b_t)],
        axis=0)                                          # (SMALL_ROWS, SMALL_W)

    # block-diagonal pooling matrix: 1/D within each real D-wide group, 0 elsewhere
    pool64 = jnp.kron(jnp.eye(NUM_EMB_OUT, dtype=jnp.float32),
                      jnp.full((DIM_EMB, DIM_EMB), 1.0 / DIM_EMB, jnp.float32))
    pool = jnp.pad(pool64, ((0, OUT_PAD - OUT_FLAT), (0, OUT_PAD - OUT_FLAT)))
    return w_lin, w_mlp, small, pool


@jax.jit
def wukong_layer(x, w_lin, w_mlp, small, pool):
    x_pad = jnp.pad(x, ((0, B_PAD - B), (0, 0), (0, 0)))   # pad batch to 8 sublanes
    xflat = x_pad.reshape(B_PAD, IN_FLAT)                  # lane-dense activation layout

    out_flat = pl.pallas_call(
        wukong_kernel,
        out_shape=jax.ShapeDtypeStruct((B_PAD, OUT_PAD), jnp.float32),
        grid_spec=pltpu.PrefetchScalarGridSpec(
            num_scalar_prefetch=0,
            grid=(B_PAD // TILE_B,),                       # single step over padded batch
            in_specs=[
                pl.BlockSpec((TILE_B, IN_FLAT), lambda i: (i, 0)),
                pl.BlockSpec((TILE_B, NUM_EMB_IN, DIM_EMB), lambda i: (i, 0, 0)),
                pl.BlockSpec((IN_FLAT, OUT_PAD), lambda i: (0, 0)),
                pl.BlockSpec((MLP_ROWS, OUT_PAD), lambda i: (0, 0)),
                pl.BlockSpec((SMALL_ROWS, SMALL_W), lambda i: (0, 0)),
                pl.BlockSpec((OUT_PAD, OUT_PAD), lambda i: (0, 0)),
            ],
            out_specs=pl.BlockSpec((TILE_B, OUT_PAD), lambda i: (i, 0)),
        ),
        compiler_params=pltpu.CompilerParams(dimension_semantics=("parallel",)),
    )(xflat, x_pad, w_lin, w_mlp, small, pool)
    return out_flat[:B, :OUT_FLAT].reshape(B, NUM_EMB_OUT, DIM_EMB)


# ---------------- pure-JAX reference (for correctness check) ----------------
def layernorm(v, g, b):
    mu = jnp.mean(v, axis=-1, keepdims=True)
    var = jnp.mean((v - mu) ** 2, axis=-1, keepdims=True)
    return (v - mu) * lax.rsqrt(var + EPS) * g + b


def ref_forward(x, params):
    (w_lcb, w_fm, ln_fm_g, ln_fm_b,
     w0, b0, w1, b1, wo, bo,
     w_res, ln_g, ln_b) = params
    with jax.default_matmul_precision("highest"):
        lcb = jnp.einsum("bed,el->bld", x, w_lcb)
        tmp = jnp.einsum("bed,er->bdr", x, w_fm)
        fm = jnp.einsum("bed,bdr->ber", x, tmp).reshape(B, FM_DIM)
        h = layernorm(fm, ln_fm_g[0], ln_fm_b[0])
        h = jax.nn.relu(h @ w0 + b0[0])
        h = jax.nn.relu(h @ w1 + b1[0])
        h = h @ wo + bo[0]
        fmb = h.reshape(B, NUM_EMB_FMB, DIM_EMB)
        cat = jnp.concatenate([fmb, lcb], axis=1)
        res = jnp.einsum("bed,eo->bod", x, w_res)
        return layernorm(cat + res, ln_g[0], ln_b[0])


# ---------------- deterministic parameter init ----------------
def kaiming_uniform(key, shape):
    fan_in = shape[-1] if len(shape) == 1 else shape[1]
    bound = float(np.sqrt(6.0 / fan_in))
    return jax.random.uniform(key, shape, jnp.float32, -bound, bound)


def linear_init(key, fan_in, fan_out):
    kw, kb = jax.random.split(key)
    bound = float(1.0 / np.sqrt(fan_in))
    w = jax.random.uniform(kw, (fan_in, fan_out), jnp.float32, -bound, bound)
    b = jax.random.uniform(kb, (1, fan_out), jnp.float32, -bound, bound)
    return w, b


def make_params(key):
    ks = jax.random.split(key, 8)
    w_lcb = kaiming_uniform(ks[0], (NUM_EMB_IN, NUM_EMB_LCB))
    w_fm = kaiming_uniform(ks[1], (NUM_EMB_IN, RANK_FMB))
    ln_fm_g = jnp.ones((1, FM_DIM), jnp.float32)
    ln_fm_b = jnp.zeros((1, FM_DIM), jnp.float32)
    w0, b0 = linear_init(ks[2], FM_DIM, DIM_HIDDEN)
    w1, b1 = linear_init(ks[3], DIM_HIDDEN, DIM_HIDDEN)
    wo, bo = linear_init(ks[4], DIM_HIDDEN, MLP_OUT)
    w_res = kaiming_uniform(ks[5], (NUM_EMB_IN, NUM_EMB_OUT))
    ln_g = jnp.ones((1, DIM_EMB), jnp.float32)
    ln_b = jnp.zeros((1, DIM_EMB), jnp.float32)
    return (w_lcb, w_fm, ln_fm_g, ln_fm_b, w0, b0, w1, b1, wo, bo, w_res, ln_g, ln_b)


if __name__ == "__main__":
    key = jax.random.PRNGKey(0)
    k_x, k_p = jax.random.split(key)
    x = jax.random.normal(k_x, (B, NUM_EMB_IN, DIM_EMB), jnp.float32)
    params = make_params(k_p)

    # parameter packing computed ONCE (not per forward call)
    packed = _pack_params(params)
    packed = tuple(jax.block_until_ready(p) for p in packed)

    out = wukong_layer(x, *packed)
    out = jax.block_until_ready(out)

    ref = jax.block_until_ready(ref_forward(x, params))
    np.testing.assert_allclose(np.asarray(out), np.asarray(ref), rtol=2e-3, atol=2e-3)
    assert out.shape == (B, NUM_EMB_OUT, DIM_EMB)

    print("KERNEL_OK")
</pallas_src>

<mosaic_0001>
module attributes {stable_mosaic.version = 11 : i64} {
  func.func @wukong_kernel(%arg0: i32, %arg1: memref<8x128xf32, #tpu.memory_space<vmem>>, %arg2: memref<8x8x16xf32, #tpu.memory_space<vmem>>, %arg3: memref<128x128xf32, #tpu.memory_space<vmem>>, %arg4: memref<96x128xf32, #tpu.memory_space<vmem>>, %arg5: memref<15x128xf32, #tpu.memory_space<vmem>>, %arg6: memref<128x128xf32, #tpu.memory_space<vmem>>, %arg7: memref<8x128xf32, #tpu.memory_space<vmem>>) attributes {dimension_semantics = [#tpu.dimension_semantics<parallel>], iteration_bounds = array<i64: 1>, scalar_prefetch = 0 : i64, scratch_operands = 0 : i64, tpu.core_type = #tpu.core_type<tc>, window_params = [{transform_indices = @transform_0, window_bounds = array<i64: 8, 128>}, {transform_indices = @transform_1, window_bounds = array<i64: 8, 8, 16>}, {pipeline_mode = #tpu.pipeline_mode<synchronous>, transform_indices = @transform_2, window_bounds = array<i64: 128, 128>}, {pipeline_mode = #tpu.pipeline_mode<synchronous>, transform_indices = @transform_3, window_bounds = array<i64: 96, 128>}, {pipeline_mode = #tpu.pipeline_mode<synchronous>, transform_indices = @transform_4, window_bounds = array<i64: 15, 128>}, {pipeline_mode = #tpu.pipeline_mode<synchronous>, transform_indices = @transform_5, window_bounds = array<i64: 128, 128>}, {transform_indices = @transform_6, window_bounds = array<i64: 8, 128>}]} {
    %c0 = arith.constant 0 : index
    %c0_0 = arith.constant 0 : index
    %0 = vector.load %arg1[%c0, %c0_0] : memref<8x128xf32, #tpu.memory_space<vmem>>, vector<8x128xf32>
    %c0_1 = arith.constant 0 : index
    %c0_2 = arith.constant 0 : index
    %c0_3 = arith.constant 0 : index
    %1 = vector.load %arg2[%c0_1, %c0_2, %c0_3] : memref<8x8x16xf32, #tpu.memory_space<vmem>>, vector<8x8x16xf32>
    %c0_4 = arith.constant 0 : index
    %c0_5 = arith.constant 0 : index
    %2 = vector.load %arg5[%c0_4, %c0_5] : memref<15x128xf32, #tpu.memory_space<vmem>>, vector<15x128xf32>
    %c0_6 = arith.constant 0 : index
    %c0_7 = arith.constant 0 : index
    %3 = vector.load %arg4[%c0_6, %c0_7] : memref<96x128xf32, #tpu.memory_space<vmem>>, vector<96x128xf32>
    %4 = vector.extract_strided_slice %2 {offsets = [0, 0], sizes = [1, 32], strides = [1, 1]} : vector<15x128xf32> to vector<1x32xf32>
    %5 = vector.extract_strided_slice %2 {offsets = [1, 0], sizes = [1, 32], strides = [1, 1]} : vector<15x128xf32> to vector<1x32xf32>
    %6 = vector.extract_strided_slice %2 {offsets = [2, 0], sizes = [1, 32], strides = [1, 1]} : vector<15x128xf32> to vector<1x32xf32>
    %7 = vector.extract_strided_slice %2 {offsets = [3, 0], sizes = [1, 32], strides = [1, 1]} : vector<15x128xf32> to vector<1x32xf32>
    %8 = vector.extract_strided_slice %2 {offsets = [4, 0], sizes = [1, 128], strides = [1, 1]} : vector<15x128xf32> to vector<1x128xf32>
    %9 = vector.extract_strided_slice %2 {offsets = [5, 0], sizes = [8, 4], strides = [1, 1]} : vector<15x128xf32> to vector<8x4xf32>
    %10 = vector.extract_strided_slice %2 {offsets = [13, 0], sizes = [1, 128], strides = [1, 1]} : vector<15x128xf32> to vector<1x128xf32>
    %11 = vector.extract_strided_slice %2 {offsets = [14, 0], sizes = [1, 128], strides = [1, 1]} : vector<15x128xf32> to vector<1x128xf32>
    %12 = vector.extract_strided_slice %3 {offsets = [0, 0], sizes = [32, 32], strides = [1, 1]} : vector<96x128xf32> to vector<32x32xf32>
    %13 = vector.extract_strided_slice %3 {offsets = [32, 0], sizes = [32, 32], strides = [1, 1]} : vector<96x128xf32> to vector<32x32xf32>
    %14 = vector.extract_strided_slice %3 {offsets = [64, 0], sizes = [32, 128], strides = [1, 1]} : vector<96x128xf32> to vector<32x128xf32>
    %c0_8 = arith.constant 0 : index
    %c0_9 = arith.constant 0 : index
    %15 = vector.load %arg3[%c0_8, %c0_9] : memref<128x128xf32, #tpu.memory_space<vmem>>, vector<128x128xf32>
    %cst = arith.constant dense<0.000000e+00> : vector<8x128xf32>
    %16 = tpu.matmul %0, %15, %cst {dimension_numbers = #tpu.dot_dimension_numbers<[1], [0], [0], [1], [0, 0, 1, 1], [], []>} : vector<8x128xf32>, vector<128x128xf32>, vector<8x128xf32> -> vector<8x128xf32>
    "tpu.trace_start"() <{level = 10 : i32, message = "bed,bfd->bef"}> : () -> ()
    %cst_10 = arith.constant dense<0.000000e+00> : vector<8x8x8xf32>
    %17 = tpu.matmul %1, %1, %cst_10 {dimension_numbers = #tpu.dot_dimension_numbers<[2], [2], [1], [1], [0, 0, 0, 1, 1, 1], [0], [0]>} : vector<8x8x16xf32>, vector<8x8x16xf32>, vector<8x8x8xf32> -> vector<8x8x8xf32>
    "tpu.trace_stop"() : () -> ()
    %18 = vector.shape_cast %9 : vector<8x4xf32> to vector<1x8x4xf32>
    %19 = vector.shape_cast %18 : vector<1x8x4xf32> to vector<1x8x4xf32>
    %20 = vector.broadcast %19 : vector<1x8x4xf32> to vector<8x8x4xf32>
    "tpu.trace_start"() <{level = 10 : i32, message = "bef,bfr->ber"}> : () -> ()
    %cst_11 = arith.constant dense<0.000000e+00> : vector<8x8x4xf32>
    %21 = tpu.matmul %17, %20, %cst_11 {dimension_numbers = #tpu.dot_dimension_numbers<[2], [1], [1], [2], [0, 0, 0, 1, 1, 2], [0], [0]>} : vector<8x8x8xf32>, vector<8x8x4xf32>, vector<8x8x4xf32> -> vector<8x8x4xf32>
    "tpu.trace_stop"() : () -> ()
    %22 = vector.shape_cast %21 : vector<8x8x4xf32> to vector<8x32xf32>
    %cst_12 = arith.constant dense<0.000000e+00> : vector<8xf32>
    %23 = vector.multi_reduction <add>, %22, %cst_12 [1] : vector<8x32xf32> to vector<8xf32>
    %24 = vector.shape_cast %23 : vector<8xf32> to vector<8x1xf32>
    %cst_13 = arith.constant 3.200000e+01 : f32
    %25 = vector.broadcast %cst_13 : f32 to vector<8x1xf32>
    %26 = arith.divf %24, %25 : vector<8x1xf32>
    %27 = vector.broadcast %26 : vector<8x1xf32> to vector<8x32xf32>
    %28 = arith.subf %22, %27 : vector<8x32xf32>
    %29 = arith.mulf %28, %28 : vector<8x32xf32>
    %cst_14 = arith.constant dense<0.000000e+00> : vector<8xf32>
    %30 = vector.multi_reduction <add>, %29, %cst_14 [1] : vector<8x32xf32> to vector<8xf32>
    %31 = vector.shape_cast %30 : vector<8xf32> to vector<8x1xf32>
    %cst_15 = arith.constant 3.200000e+01 : f32
    %32 = vector.broadcast %cst_15 : f32 to vector<8x1xf32>
    %33 = arith.divf %31, %32 : vector<8x1xf32>
    %34 = vector.broadcast %26 : vector<8x1xf32> to vector<8x32xf32>
    %35 = arith.subf %22, %34 : vector<8x32xf32>
    %cst_16 = arith.constant 9.99999974E-6 : f32
    %36 = vector.broadcast %cst_16 : f32 to vector<8x1xf32>
    %37 = arith.addf %33, %36 : vector<8x1xf32>
    %38 = math.rsqrt %37 : vector<8x1xf32>
    %39 = vector.broadcast %38 : vector<8x1xf32> to vector<8x32xf32>
    %40 = arith.mulf %35, %39 : vector<8x32xf32>
    %41 = vector.broadcast %4 : vector<1x32xf32> to vector<8x32xf32>
    %42 = arith.mulf %40, %41 : vector<8x32xf32>
    %43 = vector.broadcast %5 : vector<1x32xf32> to vector<8x32xf32>
    %44 = arith.addf %42, %43 : vector<8x32xf32>
    %cst_17 = arith.constant dense<0.000000e+00> : vector<8x32xf32>
    %45 = tpu.matmul %44, %12, %cst_17 {dimension_numbers = #tpu.dot_dimension_numbers<[1], [0], [0], [1], [0, 0, 1, 1], [], []>} : vector<8x32xf32>, vector<32x32xf32>, vector<8x32xf32> -> vector<8x32xf32>
    %46 = vector.broadcast %6 : vector<1x32xf32> to vector<8x32xf32>
    %47 = arith.addf %45, %46 : vector<8x32xf32>
    %cst_18 = arith.constant 0.000000e+00 : f32
    %48 = vector.broadcast %cst_18 : f32 to vector<8x32xf32>
    %49 = arith.maximumf %47, %48 : vector<8x32xf32>
    %cst_19 = arith.constant dense<0.000000e+00> : vector<8x32xf32>
    %50 = tpu.matmul %49, %13, %cst_19 {dimension_numbers = #tpu.dot_dimension_numbers<[1], [0], [0], [1], [0, 0, 1, 1], [], []>} : vector<8x32xf32>, vector<32x32xf32>, vector<8x32xf32> -> vector<8x32xf32>
    %51 = vector.broadcast %7 : vector<1x32xf32> to vector<8x32xf32>
    %52 = arith.addf %50, %51 : vector<8x32xf32>
    %cst_20 = arith.constant 0.000000e+00 : f32
    %53 = vector.broadcast %cst_20 : f32 to vector<8x32xf32>
    %54 = arith.maximumf %52, %53 : vector<8x32xf32>
    %cst_21 = arith.constant dense<0.000000e+00> : vector<8x128xf32>
    %55 = tpu.matmul %54, %14, %cst_21 {dimension_numbers = #tpu.dot_dimension_numbers<[1], [0], [0], [1], [0, 0, 1, 1], [], []>} : vector<8x32xf32>, vector<32x128xf32>, vector<8x128xf32> -> vector<8x128xf32>
    %56 = vector.broadcast %8 : vector<1x128xf32> to vector<8x128xf32>
    %57 = arith.addf %55, %56 : vector<8x128xf32>
    %58 = arith.addf %16, %57 : vector<8x128xf32>
    %c0_22 = arith.constant 0 : index
    %c0_23 = arith.constant 0 : index
    %59 = vector.load %arg6[%c0_22, %c0_23] : memref<128x128xf32, #tpu.memory_space<vmem>>, vector<128x128xf32>
    %cst_24 = arith.constant dense<0.000000e+00> : vector<8x128xf32>
    %60 = tpu.matmul %58, %59, %cst_24 {dimension_numbers = #tpu.dot_dimension_numbers<[1], [0], [0], [1], [0, 0, 1, 1], [], []>} : vector<8x128xf32>, vector<128x128xf32>, vector<8x128xf32> -> vector<8x128xf32>
    %61 = arith.subf %58, %60 : vector<8x128xf32>
    %62 = arith.mulf %61, %61 : vector<8x128xf32>
    %cst_25 = arith.constant dense<0.000000e+00> : vector<8x128xf32>
    %63 = tpu.matmul %62, %59, %cst_25 {dimension_numbers = #tpu.dot_dimension_numbers<[1], [0], [0], [1], [0, 0, 1, 1], [], []>} : vector<8x128xf32>, vector<128x128xf32>, vector<8x128xf32> -> vector<8x128xf32>
    %cst_26 = arith.constant 9.99999974E-6 : f32
    %64 = vector.broadcast %cst_26 : f32 to vector<8x128xf32>
    %65 = arith.addf %63, %64 : vector<8x128xf32>
    %66 = math.rsqrt %65 : vector<8x128xf32>
    %67 = arith.mulf %61, %66 : vector<8x128xf32>
    %68 = vector.broadcast %10 : vector<1x128xf32> to vector<8x128xf32>
    %69 = arith.mulf %67, %68 : vector<8x128xf32>
    %70 = vector.broadcast %11 : vector<1x128xf32> to vector<8x128xf32>
    %71 = arith.addf %69, %70 : vector<8x128xf32>
    %c0_27 = arith.constant 0 : index
    %c0_28 = arith.constant 0 : index
    %72 = vector.load %arg7[%c0_27, %c0_28] : memref<8x128xf32, #tpu.memory_space<vmem>>, vector<8x128xf32>
    tpu.vector_store %arg7[%c0_27, %c0_28], %71 {strides = array<i32>} : memref<8x128xf32, #tpu.memory_space<vmem>>, vector<8x128xf32>,
    return
  }
  func.func @transform_0(%arg0: i32) -> (i32, i32) {
    %c0_i32 = arith.constant 0 : i32
    %c0_i32_0 = arith.constant 0 : i32
    return %arg0, %c0_i32 : i32, i32
  }
  func.func @transform_1(%arg0: i32) -> (i32, i32, i32) {
    %c0_i32 = arith.constant 0 : i32
    %c0_i32_0 = arith.constant 0 : i32
    %c0_i32_1 = arith.constant 0 : i32
    return %arg0, %c0_i32, %c0_i32_0 : i32, i32, i32
  }
  func.func @transform_2(%arg0: i32) -> (i32, i32) {
    %c0_i32 = arith.constant 0 : i32
    %c0_i32_0 = arith.constant 0 : i32
    %c0_i32_1 = arith.constant 0 : i32
    return %c0_i32, %c0_i32_0 : i32, i32
  }
  func.func @transform_3(%arg0: i32) -> (i32, i32) {
    %c0_i32 = arith.constant 0 : i32
    %c0_i32_0 = arith.constant 0 : i32
    %c0_i32_1 = arith.constant 0 : i32
    return %c0_i32, %c0_i32_0 : i32, i32
  }
  func.func @transform_4(%arg0: i32) -> (i32, i32) {
    %c0_i32 = arith.constant 0 : i32
    %c0_i32_0 = arith.constant 0 : i32
    %c0_i32_1 = arith.constant 0 : i32
    return %c0_i32, %c0_i32_0 : i32, i32
  }
  func.func @transform_5(%arg0: i32) -> (i32, i32) {
    %c0_i32 = arith.constant 0 : i32
    %c0_i32_0 = arith.constant 0 : i32
    %c0_i32_1 = arith.constant 0 : i32
    return %c0_i32, %c0_i32_0 : i32, i32
  }
  func.func @transform_6(%arg0: i32) -> (i32, i32) {
    %c0_i32 = arith.constant 0 : i32
    %c0_i32_0 = arith.constant 0 : i32
    return %arg0, %c0_i32 : i32, i32
  }
}

</mosaic_0001>

<bundles_post_ra>
// kernel: wukong_layer.1
= control target key start
LH: loop header
LB: loop body
LE: loop exit
PB: predicated region body
PF: predicated region fallthrough
CT: control target
= control target key end

     0   :  { %11 = vsyncpa [#allocation3], 0  ;;  %s1139_s0 = inlined_call_operand.vmem [shape: f32[8,128], index: 0, kind: input, shape index: {}]   ;;  %s1140_s1 = inlined_call_operand.vmem [shape: f32[8,8,16], index: 1, kind: input, shape index: {}]   ;;  %s1141_s2 = inlined_call_operand.vmem [shape: f32[128,128], index: 2, kind: input, shape index: {}]   ;;  %s1142_s3 = inlined_call_operand.hbm [shape: f32[96,128], index: 3, kind: input, shape index: {}]   ;;  %s1143_s4 = inlined_call_operand.vmem [shape: f32[15,128], index: 4, kind: input, shape index: {}]   ;;  %s1144_s5 = inlined_call_operand.hbm [shape: f32[128,128], index: 5, kind: input, shape index: {}]   ;;  %s1145_s6 = inlined_call_operand.vmem [shape: f32[8,128], index: 6, kind: output, shape index: {}]  }
   0x1   :  { %s23_s23 = sshll.u32 %s1142_s3, 4  ;;  %s24_s23 = int_to_ptr.hbm [resolvable:$true] %s23_s23 }
   0x2   :  { %12 = vsyncpa [#allocation5], 0  ;;  %s930_s24 = smov [#allocation2]   ;;  %s38_s28 = sshll.u32 %s1144_s5, 4  ;;  %s39_s28 = int_to_ptr.hbm [resolvable:$true] %s38_s28 }
   0x3   :  { %s25_s25 = sshll.u32 %s930_s24, 4  ;;  %s931_s29 = smov 128   ;;  %s26_s25 = int_to_ptr.vmem [resolvable:$true] %s25_s25 }
   0x4   :  { %s932_s30 = smov 8   ;;  %s933_s7 = smov [#allocation4]  }
   0x5   :  { %31 = dma.hbm_to_vmem [thread:$0]  %s24_s23, 1536, %s26_s25, [#allocation3], %s931_s29, %s931_s29, %s932_s30  }
   0x6   :  { %s40_s8 = sshll.u32 %s933_s7, 4  ;;  %s41_s8 = int_to_ptr.vmem [resolvable:$true] %s40_s8 }
   0x7   :  { %46 = dma.hbm_to_vmem [thread:$0]  %s39_s28, 2048, %s41_s8, [#allocation5], %s931_s29, %s931_s29, %s932_s30  }
   0x8   :  { %926 = dma.done.wait [#allocation3], 1536  }
   0x9   :  { %927 = vsyncadd [#allocation3], 4294965760 }
   0xa   :  { %928 = dma.done.wait [#allocation5], 2048  }
   0xb   :  { %929 = vsyncadd [#allocation5], 4294965248  ;;  %vm94_vm0 = vcmask 130048   ;;  %v56_v0 = vld [vmem:[%s1140_s1] sm:$0xff]  ;;  %v59_v1 = vld [vmem:[%s1140_s1 + $0x18] sm:$0xff]  ;;  %vm281_vm1 = vcmask 1042432  }
   0xc   :  { %v57_v2 = vld [vmem:[%s1140_s1 + $0x8] sm:$0xff]  ;;  %832 = vmatpush.xpose.msk.msra.mxu2 %vm94_vm0, %v56_v0  ;;  %838 = vmatpush.xpose.msk.msra.mxu3 %vm94_vm0, %v59_v1  ;;  %v63_v3 = vld [vmem:[%s1140_s1 + $0x38] sm:$0xff]  ;;  %v58_v4 = vld [vmem:[%s1140_s1 + $0x10] sm:$0xff]  ;;  %vm286_vm2 = vcmask 64512   ;;  %v934_v25 = vmov 1983009808  }
   0xd   :  { %v61_v5 = vld [vmem:[%s1140_s1 + $0x28] sm:$0xff]  ;;  %v60_v6 = vld [vmem:[%s1140_s1 + $0x20] sm:$0xff]  ;;  %v62_v7 = vld [vmem:[%s1140_s1 + $0x30] sm:$0xff]  ;;  %v477_v26 = vunpack.c.l.s4 %v934_v25  ;;  %vm472_vm3 = vcmask 1047556   ;;  %v935_v41 = vmov 1934713408  }
   0xe   :  { %842 = vmatpush.xpose.msk.msra.mxu1 %vm94_vm0, %v61_v5  ;;  %840 = vmatpush.xpose.msk.msra.mxu0 %vm94_vm0, %v60_v6  ;;  %v1029_v8 = vld [vmem:[%s1143_s4] sm:$0xff]  ;;  %v1034_v9 = vld [vmem:[%s1143_s4 + $0x8] sm:$0x7f]  ;;  %v525_v42 = vunpack.c.l.s4 %v935_v41  ;;  %s936_s1 = smov 20   ;;  %s937_s4 = smov 4   ;;  %vm612_vm4 = vcmask 31744  }
   0xf   :  { %833 = vmatmul.msk.f32.vlgmr.msra.gmra.mxu2 %vm94_vm0, %v56_v0  ;;  %839 = vmatmul.msk.f32.vlgmr.msra.gmra.mxu3 %vm94_vm0, %v59_v1  ;;  %v282_v10 = vrot.slane %v1029_v8, 5  ;;  %v283_v11 = vrot.slane %v1034_v9, 5  ;;  %v478_v32 = vunpack.c.0.s8 %v477_v26  ;;  %s938_s27 = smov 12   ;;  %s939_s28 = smov 24   ;;  %vm615_vm5 = vcmask 97280  }
  0x10   :  { %834 = vmatpush.xpose.msk.msrb.mxu2 %vm94_vm0, %v57_v2  ;;  %846 = vmatpush.xpose.msk.msrb.mxu3 %vm94_vm0, %v63_v3  ;;  %v526_v52 = vunpack.c.0.s8 %v525_v42  ;;  %s940_s29 = smov 16   ;;  %s941_s7 = smov 28   ;;  %vm618_vm6 = vcmask 162816   ;;  %vm620_vm7 = vcmask 195584   ;;  %vm622_vm8 = vcmask 228352  }
  0x11   :  { %843 = vmatmul.msk.f32.vlgmr.msra.gmra.mxu1 %vm94_vm0, %v61_v5  ;;  %841 = vmatmul.msk.f32.vlgmr.msra.gmra.mxu0 %vm94_vm0, %v60_v6  ;;  %v284_v12 = vsel %vm281_vm1, %v282_v10, %v283_v11  ;;  %vm624_vm9 = vcmask 261120  }
  0x12   :  { %305 = vmatpush.msrb.mxu0 %v284_v12  ;;  %328 = vmatpush.msrb.mxu1 %v284_v12 }
  0x14   :  { %836 = vmatpush.xpose.msk.msra.mxu2 %vm94_vm0, %v58_v4  ;;  %374 = vmatpush.msra.mxu3 %v284_v12 }
  0x15   :  { %420 = vmatpush.msra.mxu1 %v284_v12  ;;  %397 = vmatpush.msra.mxu0 %v284_v12 }
  0x17   :  { %835 = vmatmul.msk.f32.vlgmr.msrb.gmra.mxu2 %vm94_vm0, %v57_v2  ;;  %847 = vmatmul.msk.f32.vlgmr.msrb.gmra.mxu3 %vm94_vm0, %v63_v3 }
  0x18   :  { %844 = vmatpush.xpose.msk.msrb.mxu2 %vm94_vm0, %v62_v7  ;;  %466 = vmatpush.msrb.mxu3 %v284_v12 }
  0x1f   :  { %837 = vmatmul.msk.f32.vlgmr.msra.gmra.mxu2 %vm94_vm0, %v58_v4 }
  0x20   :  { %351 = vmatpush.msra.mxu2 %v284_v12 }
  0x27   :  { %845 = vmatmul.msk.f32.vlgmr.msrb.gmra.mxu2 %vm94_vm0, %v62_v7 }
  0x28   :  { %443 = vmatpush.msrb.mxu2 %v284_v12 }
  0x8e   :  { %v207_v15 = vpop.f32.mrf.mxu0  ;;  %v230_v18 = vpop.f32.mrf.mxu1 }
  0x92   :  { %v115_v13 = vpop.f32.mrf.mxu2  ;;  %v184_v14 = vpop.f32.mrf.mxu3 }
  0x93   :  { %848 = vmatmul.msk.f32.vlgmr.msrb.gmra.mxu0 %vm286_vm2, %v115_v13  ;;  %851 = vmatmul.msk.f32.vlgmr.msra.gmra.mxu3 %vm286_vm2, %v184_v14 }
  0x9a   :  { %v138_v16 = vpop.f32.mrf.mxu2  ;;  %v276_v17 = vpop.f32.mrf.mxu3 }
  0x9b   :  { %849 = vmatmul.msk.f32.vlgmr.msrb.gmra.mxu1 %vm286_vm2, %v138_v16  ;;  %855 = vmatmul.msk.f32.vlgmr.msrb.gmra.mxu3 %vm286_vm2, %v276_v17 }
  0x9c   :  { %852 = vmatmul.msk.f32.vlgmr.msra.gmra.mxu0 %vm286_vm2, %v207_v15 }
  0xa2   :  { %v161_v19 = vpop.f32.mrf.mxu2 }
  0xa3   :  { %850 = vmatmul.msk.f32.vlgmr.msra.gmra.mxu2 %vm286_vm2, %v161_v19  ;;  %853 = vmatmul.msk.f32.vlgmr.msra.gmra.mxu1 %vm286_vm2, %v230_v18 }
  0xaa   :  { %v253_v20 = vpop.f32.mrf.mxu2 }
  0xab   :  { %854 = vmatmul.msk.f32.vlgmr.msrb.gmra.mxu2 %vm286_vm2, %v253_v20 }
 0x110   :  { %v307_v24 = vpop.f32.mrf.mxu0 }
 0x111   :  { %v474_v33 = vrot.slane %v307_v24, 4 }
 0x116   :  { %v376_v22 = vpop.f32.mrf.mxu3 }
 0x117   :  { %v484_v28 = vrot.slane %v376_v22, 4 }
 0x118   :  { %v330_v21 = vpop.f32.mrf.mxu1 }
 0x119   :  { %v486_v23 = vrot.slane %v330_v21, 4  ;;  %v485_v34 = vsel %vm472_vm3, %v484_v28, %v330_v21  ;;  %v399_v45 = vpop.f32.mrf.mxu0 }
 0x11a   :  { %v491_v43 = vperm.slane %v485_v34, %v478_v32  ;;  %v498_v51 = vrot.slane %v399_v45, 4 }
 0x11b   :  { %v487_v30 = vsel %vm472_vm3, %v376_v22, %v486_v23 }
 0x11c   :  { %v495_v36 = vperm.slane %v487_v30, %v478_v32  ;;  %v520_v53 = vrot.slane %v491_v43, 4 }
 0x11e   :  { %v468_v29 = vpop.f32.mrf.mxu3  ;;  %v532_v48 = vrot.slane %v495_v36, 4 }
 0x11f   :  { %v508_v35 = vrot.slane %v468_v29, 4 }
 0x120   :  { %v422_v27 = vpop.f32.mrf.mxu1 }
 0x121   :  { %v510_v31 = vrot.slane %v422_v27, 4  ;;  %v509_v47 = vsel %vm472_vm3, %v508_v35, %v422_v27 }
 0x122   :  { %v515_v56 = vperm.slane %v509_v47, %v478_v32 }
 0x123   :  { %v511_v40 = vsel %vm472_vm3, %v468_v29, %v510_v31 }
 0x124   :  { %v519_v50 = vperm.slane %v511_v40, %v478_v32  ;;  %v544_v63 = vrot.slane %v515_v56, 4 }
 0x126   :  { %v353_v37 = vpop.f32.mrf.mxu2  ;;  %v556_v57 = vrot.slane %v519_v50, 4 }
 0x127   :  { %v471_v38 = vrot.slane %v353_v37, 4  ;;  %v475_v39 = vsel %vm472_vm3, %v353_v37, %v474_v33 }
 0x128   :  { %v483_v44 = vperm.slane %v475_v39, %v478_v32 }
 0x129   :  { %v473_v46 = vsel %vm472_vm3, %v471_v38, %v307_v24 }
 0x12a   :  { %v479_v49 = vperm.slane %v473_v46, %v478_v32  ;;  %v533_v55 = vsel %vm472_vm3, %v532_v48, %v483_v44  ;;  %v534_v12 = vrot.slane %v483_v44, 4 }
 0x12b   :  { %v539_v62 = vperm.slane %v533_v55, %v526_v52 }
 0x12c   :  { %v522_v54 = vrot.slane %v479_v49, 4  ;;  %v521_v59 = vsel %vm472_vm3, %v520_v53, %v479_v49  ;;  %v535_v25 = vsel %vm472_vm3, %v495_v36, %v534_v12 }
 0x12d   :  { %v527_v3 = vperm.slane %v521_v59, %v526_v52  ;;  %v578_v10 = vrot.slane %v539_v62, 4  ;;  %v543_v29 = vperm.slane %v535_v25, %v526_v52  ;;  %v93_v25 = vld [vmem:[%s1141_s2 + $0x78] sm:$0xff] }
 0x12e   :  { %v445_v58 = vpop.f32.mrf.mxu2  ;;  %v523_v1 = vsel %vm472_vm3, %v491_v43, %v522_v54  ;;  %732 = vmatpush.msra.mxu3 %v93_v25 }
 0x12f   :  { %v496_v60 = vrot.slane %v445_v58, 4  ;;  %v499_v61 = vsel %vm472_vm3, %v445_v58, %v498_v51  ;;  %v531_v11 = vperm.slane %v523_v1, %v526_v52  ;;  %v570_v18 = vrot.slane %v527_v3, 4  ;;  %v68_v1 = vld [vmem:[#allocation2 + $0x10] sm:$0xff] }
 0x130   :  { %v507_v0 = vperm.slane %v499_v61, %v478_v32  ;;  %v582_v35 = vrot.slane %v543_v29, 4 }
 0x131   :  { %v497_v2 = vsel %vm472_vm3, %v496_v60, %v399_v45  ;;  %v574_v24 = vrot.slane %v531_v11, 4 }
 0x132   :  { %v503_v4 = vperm.slane %v497_v2, %v478_v32  ;;  %v558_v5 = vrot.slane %v507_v0, 4  ;;  %v557_v6 = vsel %vm472_vm3, %v556_v57, %v507_v0  ;;  %v69_v0 = vld [vmem:[#allocation2 + $0x18] sm:$0xff]  ;;  %v67_v2 = vld [vmem:[#allocation2 + $0x8] sm:$0xff] }
 0x133   :  { %v563_v7 = vperm.slane %v557_v6, %v526_v52  ;;  %674 = vmatpush.msrb.mxu0 %v69_v0 }
 0x134   :  { %v546_v13 = vrot.slane %v503_v4, 4  ;;  %v545_v14 = vsel %vm472_vm3, %v544_v63, %v503_v4  ;;  %v559_v15 = vsel %vm472_vm3, %v519_v50, %v558_v5  ;;  %v73_v4 = vld [vmem:[#allocation2 + $0x38] sm:$0xff]  ;;  %v72_v5 = vld [vmem:[#allocation2 + $0x30] sm:$0xff] }
 0x135   :  { %v579_v16 = vsel %vm472_vm3, %v563_v7, %v578_v10  ;;  %v551_v17 = vperm.slane %v545_v14, %v526_v52  ;;  %v567_v19 = vperm.slane %v559_v15, %v526_v52  ;;  %v576_v32 = vrot.slane %v563_v7, 4  ;;  %675 = vmatpush.msrb.mxu0 %v68_v1  ;;  %699 = vmatpush.msrb.mxu1 %v73_v4  ;;  %v753_v4 = vld [vmem:[#allocation4 + $0x8] sm:$0xff] }
 0x136   :  { %601 = vrot.lane.b32.xlu2 %v579_v16, %s936_s1  ;;  %v547_v20 = vsel %vm472_vm3, %v515_v56, %v546_v13 }
 0x137   :  { %v571_v21 = vsel %vm472_vm3, %v551_v17, %v570_v18  ;;  %v568_v22 = vrot.slane %v551_v17, 4  ;;  %v555_v23 = vperm.slane %v547_v20, %v526_v52  ;;  %v580_v27 = vrot.slane %v567_v19, 4  ;;  %676 = vmatpush.msrb.mxu0 %v67_v2  ;;  %700 = vmatpush.msrb.mxu1 %v72_v5  ;;  %v752_v5 = vld [vmem:[#allocation4] sm:$0xff] }
 0x138   :  { %585 = vrot.lane.b32.xlu0 %v571_v21, %s937_s4  ;;  %v577_v34 = vsel %vm472_vm3, %v576_v32, %v539_v62  ;;  %v583_v36 = vsel %vm472_vm3, %v567_v19, %v582_v35  ;;  %v942_v52 = vmov 32.0   ;;  %v654_v17 = vperm.slane %v1029_v8, 0  ;;  %v88_v32 = vld [vmem:[%s1141_s2 + $0x50] sm:$0xff]  ;;  %v85_v35 = vld [vmem:[%s1141_s2 + $0x38] sm:$0xff] }
 0x139   :  { %v575_v26 = vsel %vm472_vm3, %v555_v23, %v574_v24  ;;  %v569_v28 = vsel %vm472_vm3, %v568_v22, %v527_v3  ;;  %v572_v30 = vrot.slane %v555_v23, 4  ;;  %v581_v31 = vsel %vm472_vm3, %v580_v27, %v543_v29  ;;  %v66_v3 = vld [vmem:[#allocation2] sm:$0xff]  ;;  %v71_v23 = vld [vmem:[#allocation2 + $0x28] sm:$0xff] }
 0x13a   :  { %593 = vrot.lane.b32.xlu1 %v575_v26, %s938_s27  ;;  %872 = vrcp.f32 %v942_v52  ;;  %677 = vmatpush.msrb.mxu0 %v66_v3  ;;  %v656_v20 = vperm.slane %v1029_v8, 1  ;;  %v70_v24 = vld [vmem:[#allocation2 + $0x20] sm:$0xff]  ;;  %v92_v26 = vld [vmem:[%s1141_s2 + $0x70] sm:$0xff]  ;;  %v91_v27 = vld [vmem:[%s1141_s2 + $0x68] sm:$0xff] }
 0x13b   :  { %v573_v33 = vsel %vm472_vm3, %v572_v30, %v531_v11  ;;  %701 = vmatpush.msrb.mxu1 %v71_v23  ;;  %733 = vmatpush.msra.mxu3 %v92_v26  ;;  %v90_v29 = vld [vmem:[%s1141_s2 + $0x60] sm:$0xff]  ;;  %v76_v30 = vld [vmem:[#allocation2 + $0x50] sm:$0xff]  ;;  %v765_v52 = vld [vmem:[#allocation4 + $0x68] sm:$0xff]  ;;  %v823_v26 = vperm.slane %v1034_v9, 6 }
 0x13c   :  { %v754_v3 = vld [vmem:[#allocation4 + $0x10] sm:$0xff] }
 0x13d   :  { %702 = vmatpush.msrb.mxu1 %v70_v24  ;;  %734 = vmatpush.msra.mxu3 %v91_v27 }
 0x13e   :  { %605 = vrot.lane.b32.xlu2 %v581_v31, %s939_s28  ;;  %v89_v31 = vld [vmem:[%s1141_s2 + $0x58] sm:$0xff] }
 0x13f   :  { %735 = vmatpush.msra.mxu3 %v90_v29 }
 0x140   :  { %589 = vrot.lane.b32.xlu0 %v573_v33, %s932_s30  ;;  %v873_v53 = vpop.eup %872  ;;  %v87_v33 = vld [vmem:[%s1141_s2 + $0x48] sm:$0xff] }
 0x141   :  { %v629_v54 = vmul.f32 32.0, %v873_v53  ;;  %vm633_vm10 = vweird.f32 %v873_v53  ;;  %736 = vmatpush.msra.mxu3 %v89_v31 }
 0x142   :  { %597 = vrot.lane.b32.xlu1 %v577_v34, %s940_s29  ;;  %v86_v34 = vld [vmem:[%s1141_s2 + $0x40] sm:$0xff] }
 0x143   :  { %v630_v55 = vsub.f32 1.0, %v629_v54  ;;  %737 = vmatpush.msra.mxu3 %v88_v32  ;;  %v763_v54 = vld [vmem:[#allocation4 + $0x58] sm:$0xff] }
 0x145   :  { %v631_v56 = vmul.f32 %v873_v53, %v630_v55  ;;  %738 = vmatpush.msra.mxu3 %v87_v33  ;;  %v762_v55 = vld [vmem:[#allocation4 + $0x50] sm:$0xff] }
 0x147   :  { %v632_v57 = vadd.f32 %v873_v53, %v631_v56  ;;  %739 = vmatpush.msra.mxu3 %v86_v34  ;;  %v761_v56 = vld [vmem:[#allocation4 + $0x48] sm:$0xff] }
 0x148   :  { %609 = vrot.lane.b32.xlu0 %v583_v36, %s941_s7  ;;  %v84_v36 = vld [vmem:[%s1141_s2 + $0x30] sm:$0xff] }
 0x149   :  { %v634_v58 = vsel %vm633_vm10, %v873_v53, %v632_v57  ;;  %740 = vmatpush.msra.mxu3 %v85_v35  ;;  %v764_v53 = vld [vmem:[#allocation4 + $0x60] sm:$0xff] }
 0x14a   :  { %v760_v57 = vld [vmem:[#allocation4 + $0x40] sm:$0xff] }
 0x14b   :  { %741 = vmatpush.msra.mxu3 %v84_v36 }
 0x190   :  { %v602_v39 = vpop.permute.xlu2 %601 }
 0x198   :  { %v606_v47 = vpop.permute.xlu2 %605 }
 0x1aa   :  { %v586_v37 = vpop.permute.xlu0 %585 }
 0x1ab   :  { %v613_v40 = vsel %vm612_vm4, %v569_v28, %v586_v37  ;;  %v77_v28 = vld [vmem:[#allocation2 + $0x58] sm:$0xff]  ;;  %v83_v37 = vld [vmem:[%s1141_s2 + $0x28] sm:$0xff] }
 0x1ac   :  { %v594_v38 = vpop.permute.xlu1 %593  ;;  %724 = vmatpush.msra.mxu2 %v77_v28  ;;  %742 = vmatpush.msra.mxu3 %v83_v37 }
 0x1ae   :  { %725 = vmatpush.msra.mxu2 %v76_v30 }
 0x1b2   :  { %v590_v41 = vpop.permute.xlu0 %589 }
 0x1b3   :  { %v614_v42 = vsel %vm286_vm2, %v613_v40, %v590_v41 }
 0x1b4   :  { %v598_v43 = vpop.permute.xlu1 %597  ;;  %v616_v44 = vsel %vm615_vm5, %v614_v42, %v594_v38  ;;  %v82_v38 = vld [vmem:[%s1141_s2 + $0x20] sm:$0xff] }
 0x1b5   :  { %v617_v45 = vsel %vm94_vm0, %v616_v44, %v598_v43  ;;  %743 = vmatpush.msra.mxu3 %v82_v38  ;;  %v81_v43 = vld [vmem:[%s1141_s2 + $0x18] sm:$0xff]  ;;  %v75_v44 = vld [vmem:[#allocation2 + $0x48] sm:$0xff] }
 0x1b6   :  { %v619_v46 = vsel %vm618_vm6, %v617_v45, %v602_v39  ;;  %v658_v39 = vperm.slane %v1029_v8, 2  ;;  %v80_v45 = vld [vmem:[%s1141_s2 + $0x10] sm:$0xff]  ;;  %726 = vmatpush.msra.mxu2 %v75_v44 }
 0x1b7   :  { %v621_v49 = vsel %vm620_vm7, %v619_v46, %v606_v47  ;;  %744 = vmatpush.msra.mxu3 %v81_v43  ;;  %v74_v46 = vld [vmem:[#allocation2 + $0x40] sm:$0xff]  ;;  %v79_v47 = vld [vmem:[%s1141_s2 + $0x8] sm:$0xff] }
 0x1b8   :  { %727 = vmatpush.msra.mxu2 %v74_v46 }
 0x1b9   :  { %745 = vmatpush.msra.mxu3 %v80_v45 }
 0x1ba   :  { %v610_v48 = vpop.permute.xlu0 %609 }
 0x1bb   :  { %v623_v50 = vsel %vm622_vm8, %v621_v49, %v610_v48  ;;  %746 = vmatpush.msra.mxu3 %v79_v47  ;;  %v78_v48 = vld [vmem:[%s1141_s2] sm:$0xff] }
 0x1bc   :  { %v625_v51 = vsel %vm624_vm9, %v623_v50, 0.0  ;;  %v55_v49 = vld [vmem:[%s1139_s0] sm:$0xff] }
 0x1bd   :  { %626 = vadd.xlane.f32.xlu1 %v625_v51  ;;  %v766_v51 = vld [vmem:[#allocation4 + $0x70] sm:$0xff]  ;;  %747 = vmatpush.msra.mxu3 %v78_v48 }
 0x1be   :  { %748 = vmatmul.f32.vlgmr.msra.gmra.mxu3 %v55_v49 }
 0x230   :  { %v627_v59 = vpop.xlane.xlu1 %626 }
 0x231   :  { %v635_v60 = vmul.f32 %v634_v58, %v627_v59  ;;  %v758_v59 = vld [vmem:[#allocation4 + $0x30] sm:$0xff] }
 0x233   :  { %v636_v61 = vsub.f32 %v623_v50, %v635_v60  ;;  %v767_v50 = vld [vmem:[#allocation4 + $0x78] sm:$0xff]  ;;  %v757_v60 = vld [vmem:[#allocation4 + $0x28] sm:$0xff] }
 0x234   :  { %768 = vmatpush.msra.mxu0 %v767_v50  ;;  %790 = vmatpush.msra.mxu1 %v767_v50 }
 0x235   :  { %v637_v62 = vmul.f32 %v636_v61, %v636_v61 }
 0x236   :  { %769 = vmatpush.msra.mxu0 %v766_v51  ;;  %791 = vmatpush.msra.mxu1 %v766_v51 }
 0x237   :  { %v638_v63 = vsel %vm624_vm9, %v637_v62, 0.0  ;;  %v755_v62 = vld [vmem:[#allocation4 + $0x18] sm:$0xff] }
 0x238   :  { %639 = vadd.xlane.f32.xlu2 %v638_v63  ;;  %770 = vmatpush.msra.mxu0 %v765_v52  ;;  %v683_v63 = vperm.slane %v1029_v8, 3 }
 0x239   :  { %792 = vmatpush.msra.mxu1 %v765_v52 }
 0x23a   :  { %771 = vmatpush.msra.mxu0 %v764_v53 }
 0x23b   :  { %793 = vmatpush.msra.mxu1 %v764_v53 }
 0x23c   :  { %772 = vmatpush.msra.mxu0 %v763_v54 }
 0x23d   :  { %794 = vmatpush.msra.mxu1 %v763_v54 }
 0x23e   :  { %773 = vmatpush.msra.mxu0 %v762_v55 }
 0x23f   :  { %795 = vmatpush.msra.mxu1 %v762_v55 }
 0x240   :  { %774 = vmatpush.msra.mxu0 %v761_v56 }
 0x241   :  { %796 = vmatpush.msra.mxu1 %v761_v56 }
 0x242   :  { %775 = vmatpush.msra.mxu0 %v760_v57 }
 0x243   :  { %797 = vmatpush.msra.mxu1 %v760_v57 }
 0x2ab   :  { %v640_v6 = vpop.xlane.xlu2 %639 }
 0x2ac   :  { %v641_v7 = vmul.f32 %v640_v6, %v634_v58  ;;  %v759_v58 = vld [vmem:[#allocation4 + $0x38] sm:$0xff]  ;;  %v708_v6 = vperm.slane %v1029_v8, 4  ;;  %v821_v8 = vperm.slane %v1034_v9, 5 }
 0x2ad   :  { %776 = vmatpush.msra.mxu0 %v759_v58  ;;  %798 = vmatpush.msra.mxu1 %v759_v58 }
 0x2ae   :  { %v642_v10 = vadd.f32 1e-05, %v641_v7 }
 0x2af   :  { %777 = vmatpush.msra.mxu0 %v758_v59  ;;  %799 = vmatpush.msra.mxu1 %v758_v59 }
 0x2b0   :  { %874 = vrsqrt.f32 %v642_v10  ;;  %vm649_vm12 = vweird.f32 %v642_v10 }
 0x2b1   :  { %778 = vmatpush.msra.mxu0 %v757_v60  ;;  %800 = vmatpush.msra.mxu1 %v757_v60 }
 0x2b6   :  { %v875_v11 = vpop.eup %874 }
 0x2b7   :  { %v644_v12 = vmul.f32 %v875_v11, %v642_v10  ;;  %vm650_vm11 = vweird.f32 %v875_v11  ;;  %v749_v10 = vpop.f32.mrf.mxu3 }
 0x2b8   :  { %vm651_vm13 = vmor %vm649_vm12, %vm650_vm11 }
 0x2b9   :  { %v645_v13 = vmul.f32 %v875_v11, %v644_v12 }
 0x2bb   :  { %v646_v14 = vmul.f32 0.5, %v645_v13 }
 0x2bd   :  { %v647_v15 = vsub.f32 1.5, %v646_v14 }
 0x2bf   :  { %v648_v16 = vmul.f32 %v875_v11, %v647_v15 }
 0x2c1   :  { %v652_v18 = vsel %vm651_vm13, %v875_v11, %v648_v16 }
 0x2c2   :  { %v653_v19 = vmul.f32 %v652_v18, %v636_v61  ;;  %v756_v61 = vld [vmem:[#allocation4 + $0x20] sm:$0xff] }
 0x2c3   :  { %779 = vmatpush.msra.mxu0 %v756_v61  ;;  %801 = vmatpush.msra.mxu1 %v756_v61 }
 0x2c4   :  { %v655_v21 = vmul.f32 %v654_v17, %v653_v19 }
 0x2c5   :  { %780 = vmatpush.msra.mxu0 %v755_v62  ;;  %802 = vmatpush.msra.mxu1 %v755_v62 }
 0x2c6   :  { %v657_v22 = vadd.f32 %v656_v20, %v655_v21 }
 0x2c7   :  { %781 = vmatpush.msra.mxu0 %v754_v3  ;;  %803 = vmatpush.msra.mxu1 %v754_v3 }
 0x2c8   :  { %856 = vmatmul.msk.f32.vlgmr.msrb.gmra.mxu0 %vm624_vm9, %v657_v22 }
 0x2c9   :  { %782 = vmatpush.msra.mxu0 %v753_v4  ;;  %804 = vmatpush.msra.mxu1 %v753_v4 }
 0x2cb   :  { %783 = vmatpush.msra.mxu0 %v752_v5  ;;  %805 = vmatpush.msra.mxu1 %v752_v5 }
 0x345   :  { %v679_v40 = vpop.f32.mrf.mxu0 }
 0x346   :  { %v680_v41 = vadd.f32 %v679_v40, %v658_v39 }
 0x348   :  { %v682_v42 = vmax.f32 %v680_v41, 0.0 }
 0x34a   :  { %857 = vmatmul.msk.f32.vlgmr.msrb.gmra.mxu1 %vm624_vm9, %v682_v42 }
 0x3c7   :  { %v704_v0 = vpop.f32.mrf.mxu1 }
 0x3c8   :  { %v705_v1 = vadd.f32 %v704_v0, %v683_v63 }
 0x3ca   :  { %v707_v2 = vmax.f32 %v705_v1, 0.0 }
 0x3cc   :  { %858 = vmatmul.msk.f32.vlgmr.msra.gmra.mxu2 %vm624_vm9, %v707_v2 }
 0x44f   :  { %v729_v7 = vpop.f32.mrf.mxu2 }
 0x450   :  { %v730_v11 = vadd.f32 %v729_v7, %v708_v6 }
 0x452   :  { %v750_v12 = vadd.f32 %v749_v10, %v730_v11 }
 0x454   :  { %784 = vmatmul.f32.vlgmr.msra.gmra.mxu0 %v750_v12 }
 0x4d1   :  { %v785_v13 = vpop.f32.mrf.mxu0 }
 0x4d2   :  { %v788_v14 = vsub.f32 %v750_v12, %v785_v13 }
 0x4d4   :  { %v789_v15 = vmul.f32 %v788_v14, %v788_v14 }
 0x4d6   :  { %806 = vmatmul.f32.vlgmr.msra.gmra.mxu1 %v789_v15 }
 0x553   :  { %v807_v16 = vpop.f32.mrf.mxu1 }
 0x554   :  { %v808_v17 = vadd.f32 1e-05, %v807_v16 }
 0x556   :  { %876 = vrsqrt.f32 %v808_v17  ;;  %vm816_vm15 = vweird.f32 %v808_v17 }
 0x55c   :  { %v877_v18 = vpop.eup %876 }
 0x55d   :  { %v811_v19 = vmul.f32 %v877_v18, %v808_v17  ;;  %vm817_vm14 = vweird.f32 %v877_v18 }
 0x55e   :  { %vm818_vm0 = vmor %vm816_vm15, %vm817_vm14 }
 0x55f   :  { %v812_v20 = vmul.f32 %v877_v18, %v811_v19 }
 0x561   :  { %v813_v21 = vmul.f32 0.5, %v812_v20 }
 0x563   :  { %v814_v22 = vsub.f32 1.5, %v813_v21 }
 0x565   :  { %v815_v23 = vmul.f32 %v877_v18, %v814_v22 }
 0x567   :  { %v819_v24 = vsel %vm818_vm0, %v877_v18, %v815_v23 }
 0x568   :  { %v820_v25 = vmul.f32 %v819_v24, %v788_v14 }
 0x56a   :  { %v822_v27 = vmul.f32 %v821_v8, %v820_v25 }
 0x56c   :  { %v824_v28 = vadd.f32 %v823_v26, %v822_v27 }
 0x56e   :  { %825 = vst [vmem:[%s1145_s6] sm:$0xff] %v824_v28 }
 0x56f   :  { %830 = vsyncpa [#allocation3], 1 }
 0x570   :  { %831 = vsyncpa [#allocation5], 1 }

</bundles_post_ra>
